<compile_context>
chip_gen: v5e
topology: v5e:2x2
jax: 0.10.0
libtpu: 0.0.40
codegen_flags: <defaults>
</compile_context>

<pallas_src>
import math

import jax
import jax.numpy as jnp
from jax.experimental import pallas as pl
from jax.experimental.pallas import tpu as pltpu

# ----------------------------- config (small synthetic BertConfig) ----------
VOCAB = 100
HIDDEN = 32
LAYERS = 2
HEADS = 4
INTER = 64
MAX_POS = 16
TYPE_VOCAB = 2
HEAD_DIM = HIDDEN // HEADS
LN_EPS = 1e-12
DTYPE = jnp.float32

_INV_SQRT2 = 1.0 / math.sqrt(2.0)
_ATTN_SCALE = 1.0 / math.sqrt(HEAD_DIM)


# ----------------------------- in-kernel helpers ----------------------------
def _gelu(x):
    # original BERT gelu: x * 0.5 * (1 + erf(x / sqrt(2)))
    return x * 0.5 * (1.0 + jax.lax.erf(x * _INV_SQRT2))


def _layernorm(x, g, b):
    # x: (rows, H) f32; g/b: (1, H)
    mu = jnp.mean(x, axis=-1, keepdims=True)
    var = jnp.mean(jnp.square(x - mu), axis=-1, keepdims=True)
    return (x - mu) * jax.lax.rsqrt(var + LN_EPS) * g + b


# ----------------------------- kernel 1: embeddings sum + LayerNorm ---------
def _embed_ln_kernel(we_ref, te_ref, pe_ref, g_ref, b_ref, o_ref):
    # per grid step: one batch element, (S, H)
    x = (we_ref[0].astype(jnp.float32)
         + te_ref[0].astype(jnp.float32)
         + pe_ref[0].astype(jnp.float32))
    o_ref[0] = _layernorm(x, g_ref[...], b_ref[...]).astype(o_ref.dtype)


def bert_embeddings(params, input_ids, token_type_ids):
    B, S = input_ids.shape
    we = params["word_emb"][input_ids]            # (B, S, H) gather (plain JAX)
    te = params["type_emb"][token_type_ids]       # (B, S, H)
    pe = params["pos_emb"][:S][None]              # (1, S, H)

    act3 = pl.BlockSpec((1, S, HIDDEN), lambda b: (b, 0, 0))
    shared3 = pl.BlockSpec((1, S, HIDDEN), lambda b: (0, 0, 0))
    vec2 = pl.BlockSpec((1, HIDDEN), lambda b: (0, 0))

    return pl.pallas_call(
        _embed_ln_kernel,
        out_shape=jax.ShapeDtypeStruct((B, S, HIDDEN), DTYPE),
        grid=(B,),
        in_specs=[act3, act3, shared3, vec2, vec2],
        out_specs=act3,
        compiler_params=pltpu.CompilerParams(dimension_semantics=("parallel",)),
    )(we, te, pe, params["emb_ln_g"], params["emb_ln_b"])


# ----------------------------- kernel 2: fully fused encoder layer ----------
def _bert_layer_kernel(x_ref, m_ref,
                       wqkv_ref, bqkv_ref,
                       wao_ref, bao_ref, aog_ref, aob_ref,
                       wi_ref, bi_ref,
                       wo_ref, bo_ref, og_ref, ob_ref,
                       out_ref, probs_ref):
    # Blocks (per grid step = one batch element):
    #   x_ref: (1, S, H)   m_ref: (1, 1, S) additive mask bias
    #   weights / biases / LN params: full arrays, resident in VMEM across steps
    x = x_ref[0].astype(jnp.float32)                     # (S, H)
    mask = m_ref[0]                                      # (1, S), broadcasts over queries

    # --- fused Q/K/V projection: one MXU pass with N = 3H -------------------
    qkv = (jnp.dot(x, wqkv_ref[...], preferred_element_type=jnp.float32)
           + bqkv_ref[...])                              # (S, 3H)

    # --- multi-head self-attention (all heads, whole sequence, one launch) --
    ctx_heads = []
    prob_heads = []
    for h in range(HEADS):                               # static unroll, lane slices
        lo = h * HEAD_DIM
        hi = lo + HEAD_DIM
        qh = qkv[:, lo:hi]                               # (S, Dh)
        kh = qkv[:, HIDDEN + lo:HIDDEN + hi]             # (S, Dh)
        vh = qkv[:, 2 * HIDDEN + lo:2 * HIDDEN + hi]     # (S, Dh)

        # scores = q @ k^T (contraction on the last dim of both; no explicit transpose)
        s = jax.lax.dot_general(qh, kh, (((1,), (1,)), ((), ())),
                                preferred_element_type=jnp.float32)
        s = s * _ATTN_SCALE + mask                       # (S, S)
        s = s - jnp.max(s, axis=-1, keepdims=True)
        e = jnp.exp(s)
        denom = jnp.sum(e, axis=-1, keepdims=True)
        p = e * pl.reciprocal(denom, approx=True)        # EUP reciprocal, off VALU path
        prob_heads.append(p)
        ctx_heads.append(jnp.dot(p, vh, preferred_element_type=jnp.float32))

    ctx = jnp.concatenate(ctx_heads, axis=-1)            # (S, H) == merged heads
    # probs packed lane-concatenated: (S, HEADS*S) -> denser stores than (S, S) per head
    probs_ref[0] = jnp.concatenate(prob_heads, axis=-1).astype(probs_ref.dtype)

    # --- attention output projection + residual + LayerNorm -----------------
    ao = (jnp.dot(ctx, wao_ref[...], preferred_element_type=jnp.float32)
          + bao_ref[...])
    h1 = _layernorm(ao + x, aog_ref[...], aob_ref[...])  # (S, H)

    # --- feed-forward (GELU) + output projection + residual + LayerNorm -----
    inter = _gelu(jnp.dot(h1, wi_ref[...], preferred_element_type=jnp.float32)
                  + bi_ref[...])                         # (S, INTER)
    oo = (jnp.dot(inter, wo_ref[...], preferred_element_type=jnp.float32)
          + bo_ref[...])
    h2 = _layernorm(oo + h1, og_ref[...], ob_ref[...])

    out_ref[0] = h2.astype(out_ref.dtype)


def bert_layer(lp, hidden, mask_bias):
    """hidden: (B, S, H); mask_bias: (B, 1, S) additive.  One pallas_call per layer."""
    B, S, H = hidden.shape

    act = pl.BlockSpec((1, S, H), lambda b: (b, 0, 0))
    msk = pl.BlockSpec((1, 1, S), lambda b: (b, 0, 0))
    prb = pl.BlockSpec((1, S, HEADS * S), lambda b: (b, 0, 0))

    def full(a):  # whole-array block, constant index -> DMA'd once, reused per step
        return pl.BlockSpec(a.shape, lambda b: (0,) * a.ndim)

    hidden_out, probs_cat = pl.pallas_call(
        _bert_layer_kernel,
        out_shape=(jax.ShapeDtypeStruct((B, S, H), hidden.dtype),
                   jax.ShapeDtypeStruct((B, S, HEADS * S), jnp.float32)),
        grid=(B,),
        in_specs=[act, msk,
                  full(lp["qkv_w"]), full(lp["qkv_b"]),
                  full(lp["ao_w"]), full(lp["ao_b"]),
                  full(lp["ao_ln_g"]), full(lp["ao_ln_b"]),
                  full(lp["i_w"]), full(lp["i_b"]),
                  full(lp["o_w"]), full(lp["o_b"]),
                  full(lp["o_ln_g"]), full(lp["o_ln_b"])],
        out_specs=(act, prb),
        compiler_params=pltpu.CompilerParams(dimension_semantics=("parallel",)),
    )(hidden, mask_bias,
      lp["qkv_w"], lp["qkv_b"],
      lp["ao_w"], lp["ao_b"], lp["ao_ln_g"], lp["ao_ln_b"],
      lp["i_w"], lp["i_b"],
      lp["o_w"], lp["o_b"], lp["o_ln_g"], lp["o_ln_b"])

    # (B, S, HEADS*S) -> (B, HEADS, S, S); tiny reorg of returned probs, fused by XLA.
    probs = probs_cat.reshape(B, S, HEADS, S).transpose(0, 2, 1, 3)
    return hidden_out, probs


# ----------------------------- kernel 3: pooler ------------------------------
def _pooler_kernel(x_ref, w_ref, b_ref, o_ref):
    y = (jnp.dot(x_ref[...], w_ref[...], preferred_element_type=jnp.float32)
         + b_ref[...])
    o_ref[...] = jnp.tanh(y).astype(o_ref.dtype)


def bert_pooler(params, sequence_output):
    B = sequence_output.shape[0]
    first_token = sequence_output[:, 0, :]               # (B, H)
    return pl.pallas_call(
        _pooler_kernel,
        out_shape=jax.ShapeDtypeStruct((B, HIDDEN), sequence_output.dtype),
        grid=(1,),
        in_specs=[pl.BlockSpec((B, HIDDEN), lambda i: (0, 0)),
                  pl.BlockSpec((HIDDEN, HIDDEN), lambda i: (0, 0)),
                  pl.BlockSpec((1, HIDDEN), lambda i: (0, 0))],
        out_specs=pl.BlockSpec((B, HIDDEN), lambda i: (0, 0)),
    )(first_token, params["pool_w"], params["pool_b"])


# ----------------------------- model -----------------------------------------
@jax.jit
def _bert_forward(params, input_ids, token_type_ids, attention_mask):
    # extended_attention_mask = (1 - mask) * -10000, kept at (B, 1, S); heads are
    # handled inside the layer kernel (no per-head broadcast in HBM).
    ext = (1.0 - attention_mask.astype(jnp.float32)) * -10000.0     # (B, S)
    mask_bias = ext[:, None, :]                                     # (B, 1, S)

    embedding_output = bert_embeddings(params, input_ids, token_type_ids)

    hidden = embedding_output
    all_encoder_layers = []
    all_encoder_attention_scores = []   # softmax attention probabilities per layer
    for lp in params["layers"]:
        hidden, probs = bert_layer(lp, hidden, mask_bias)
        all_encoder_layers.append(hidden)
        all_encoder_attention_scores.append(probs)

    sequence_output = all_encoder_layers[-1]
    # TODO(synk): skenlp BERTPooler's `optional_attn_mask` semantics unknown; standard
    # BERT pooler (first-token -> dense -> tanh) is implemented here.
    pooled_output = bert_pooler(params, sequence_output)

    return (all_encoder_layers, pooled_output,
            all_encoder_attention_scores, embedding_output)


def bert_model(params, input_ids, token_type_ids=None, attention_mask=None):
    if attention_mask is None:
        attention_mask = jnp.ones_like(input_ids)
    if token_type_ids is None:
        token_type_ids = jnp.zeros_like(input_ids)
    return _bert_forward(params, input_ids, token_type_ids, attention_mask)


# ----------------------------- deterministic parameter init ------------------
def init_params(key):
    std = 0.02

    def dense(k, fan_in, fan_out):
        return (jax.random.normal(k, (fan_in, fan_out), DTYPE) * std,
                jnp.zeros((1, fan_out), DTYPE))

    keys = jax.random.split(key, 8 + LAYERS)
    params = {
        "word_emb": jax.random.normal(keys[0], (VOCAB, HIDDEN), DTYPE) * std,
        "pos_emb": jax.random.normal(keys[1], (MAX_POS, HIDDEN), DTYPE) * std,
        "type_emb": jax.random.normal(keys[2], (TYPE_VOCAB, HIDDEN), DTYPE) * std,
        "emb_ln_g": jnp.ones((1, HIDDEN), DTYPE),
        "emb_ln_b": jnp.zeros((1, HIDDEN), DTYPE),
        "layers": [],
    }
    params["pool_w"], params["pool_b"] = dense(keys[3], HIDDEN, HIDDEN)

    for l in range(LAYERS):
        lk = jax.random.split(keys[8 + l], 6)
        qw, qb = dense(lk[0], HIDDEN, HIDDEN)
        kw, kb = dense(lk[1], HIDDEN, HIDDEN)
        vw, vb = dense(lk[2], HIDDEN, HIDDEN)
        aow, aob = dense(lk[3], HIDDEN, HIDDEN)
        iw, ib = dense(lk[4], HIDDEN, INTER)
        ow, ob = dense(lk[5], INTER, HIDDEN)
        params["layers"].append({
            # Q/K/V fused: y[:, :H]=Q, y[:, H:2H]=K, y[:, 2H:]=V
            "qkv_w": jnp.concatenate([qw, kw, vw], axis=1),     # (H, 3H)
            "qkv_b": jnp.concatenate([qb, kb, vb], axis=1),     # (1, 3H)
            "ao_w": aow, "ao_b": aob,
            "ao_ln_g": jnp.ones((1, HIDDEN), DTYPE),
            "ao_ln_b": jnp.zeros((1, HIDDEN), DTYPE),
            "i_w": iw, "i_b": ib, "o_w": ow, "o_b": ob,
            "o_ln_g": jnp.ones((1, HIDDEN), DTYPE),
            "o_ln_b": jnp.zeros((1, HIDDEN), DTYPE),
        })
    return params


# ----------------------------- demo -------------------------------------------
if __name__ == "__main__":
    B, S = 2, 8
    key = jax.random.PRNGKey(0)
    pkey, ikey = jax.random.split(key)

    params = init_params(pkey)

    input_ids = jax.random.randint(ikey, (B, S), 0, VOCAB, dtype=jnp.int32)
    token_type_ids = jnp.zeros((B, S), jnp.int32).at[:, S // 2:].set(1)
    attention_mask = jnp.ones((B, S), jnp.int32).at[1, S - 2:].set(0)  # pad tail of 2nd seq

    (all_layers, pooled, all_scores, emb) = bert_model(
        params, input_ids, token_type_ids, attention_mask)

    jax.block_until_ready(pooled)
    jax.block_until_ready(all_layers[-1])
    jax.block_until_ready(all_scores[-1])
    jax.block_until_ready(emb)

    assert all_layers[-1].shape == (B, S, HIDDEN)
    assert pooled.shape == (B, HIDDEN)
    assert all_scores[-1].shape == (B, HEADS, S, S)
    assert emb.shape == (B, S, HIDDEN)
    assert bool(jnp.all(jnp.isfinite(pooled)))
    assert bool(jnp.all(jnp.isfinite(all_layers[-1])))

    print("KERNEL_OK")
</pallas_src>

<mosaic_0001>
module attributes {stable_mosaic.version = 11 : i64} {
  func.func @_bert_layer_kernel(%arg0: i32, %arg1: memref<1x8x32xf32, #tpu.memory_space<vmem>>, %arg2: memref<1x1x8xf32, #tpu.memory_space<vmem>>, %arg3: memref<32x96xf32, #tpu.memory_space<vmem>>, %arg4: memref<1x96xf32, #tpu.memory_space<vmem>>, %arg5: memref<32x32xf32, #tpu.memory_space<vmem>>, %arg6: memref<1x32xf32, #tpu.memory_space<vmem>>, %arg7: memref<1x32xf32, #tpu.memory_space<vmem>>, %arg8: memref<1x32xf32, #tpu.memory_space<vmem>>, %arg9: memref<32x64xf32, #tpu.memory_space<vmem>>, %arg10: memref<1x64xf32, #tpu.memory_space<vmem>>, %arg11: memref<64x32xf32, #tpu.memory_space<vmem>>, %arg12: memref<1x32xf32, #tpu.memory_space<vmem>>, %arg13: memref<1x32xf32, #tpu.memory_space<vmem>>, %arg14: memref<1x32xf32, #tpu.memory_space<vmem>>, %arg15: memref<1x8x32xf32, #tpu.memory_space<vmem>>, %arg16: memref<1x8x32xf32, #tpu.memory_space<vmem>>) attributes {dimension_semantics = [#tpu.dimension_semantics<parallel>], iteration_bounds = array<i64: 2>, scalar_prefetch = 0 : i64, scratch_operands = 0 : i64, tpu.core_type = #tpu.core_type<tc>, window_params = [{transform_indices = @transform_0, window_bounds = array<i64: 1, 8, 32>}, {transform_indices = @transform_1, window_bounds = array<i64: 1, 1, 8>}, {pipeline_mode = #tpu.pipeline_mode<synchronous>, transform_indices = @transform_2, window_bounds = array<i64: 32, 96>}, {pipeline_mode = #tpu.pipeline_mode<synchronous>, transform_indices = @transform_3, window_bounds = array<i64: 1, 96>}, {pipeline_mode = #tpu.pipeline_mode<synchronous>, transform_indices = @transform_4, window_bounds = array<i64: 32, 32>}, {pipeline_mode = #tpu.pipeline_mode<synchronous>, transform_indices = @transform_5, window_bounds = array<i64: 1, 32>}, {pipeline_mode = #tpu.pipeline_mode<synchronous>, transform_indices = @transform_6, window_bounds = array<i64: 1, 32>}, {pipeline_mode = #tpu.pipeline_mode<synchronous>, transform_indices = @transform_7, window_bounds = array<i64: 1, 32>}, {pipeline_mode = #tpu.pipeline_mode<synchronous>, transform_indices = @transform_8, window_bounds = array<i64: 32, 64>}, {pipeline_mode = #tpu.pipeline_mode<synchronous>, transform_indices = @transform_9, window_bounds = array<i64: 1, 64>}, {pipeline_mode = #tpu.pipeline_mode<synchronous>, transform_indices = @transform_10, window_bounds = array<i64: 64, 32>}, {pipeline_mode = #tpu.pipeline_mode<synchronous>, transform_indices = @transform_11, window_bounds = array<i64: 1, 32>}, {pipeline_mode = #tpu.pipeline_mode<synchronous>, transform_indices = @transform_12, window_bounds = array<i64: 1, 32>}, {pipeline_mode = #tpu.pipeline_mode<synchronous>, transform_indices = @transform_13, window_bounds = array<i64: 1, 32>}, {transform_indices = @transform_14, window_bounds = array<i64: 1, 8, 32>}, {transform_indices = @transform_15, window_bounds = array<i64: 1, 8, 32>}]} {
    %c0 = arith.constant 0 : index
    %c0_0 = arith.constant 0 : index
    %c0_1 = arith.constant 0 : index
    %0 = vector.load %arg1[%c0, %c0_0, %c0_1] : memref<1x8x32xf32, #tpu.memory_space<vmem>>, vector<1x8x32xf32>
    %1 = vector.shape_cast %0 : vector<1x8x32xf32> to vector<8x32xf32>
    %c0_2 = arith.constant 0 : index
    %c0_3 = arith.constant 0 : index
    %c0_4 = arith.constant 0 : index
    %2 = vector.load %arg2[%c0_2, %c0_3, %c0_4] : memref<1x1x8xf32, #tpu.memory_space<vmem>>, vector<1x1x8xf32>
    %3 = vector.shape_cast %2 : vector<1x1x8xf32> to vector<1x8xf32>
    %c0_5 = arith.constant 0 : index
    %c0_6 = arith.constant 0 : index
    %4 = vector.load %arg3[%c0_5, %c0_6] : memref<32x96xf32, #tpu.memory_space<vmem>>, vector<32x96xf32>
    %cst = arith.constant dense<0.000000e+00> : vector<8x96xf32>
    %5 = tpu.matmul %1, %4, %cst {dimension_numbers = #tpu.dot_dimension_numbers<[1], [0], [0], [1], [0, 0, 1, 1], [], []>} : vector<8x32xf32>, vector<32x96xf32>, vector<8x96xf32> -> vector<8x96xf32>
    %c0_7 = arith.constant 0 : index
    %c0_8 = arith.constant 0 : index
    %6 = vector.load %arg4[%c0_7, %c0_8] : memref<1x96xf32, #tpu.memory_space<vmem>>, vector<1x96xf32>
    %7 = vector.broadcast %6 : vector<1x96xf32> to vector<8x96xf32>
    %8 = arith.addf %5, %7 : vector<8x96xf32>
    %9 = vector.extract_strided_slice %8 {offsets = [0, 0], sizes = [8, 8], strides = [1, 1]} : vector<8x96xf32> to vector<8x8xf32>
    %10 = vector.extract_strided_slice %8 {offsets = [0, 32], sizes = [8, 8], strides = [1, 1]} : vector<8x96xf32> to vector<8x8xf32>
    %11 = vector.extract_strided_slice %8 {offsets = [0, 64], sizes = [8, 8], strides = [1, 1]} : vector<8x96xf32> to vector<8x8xf32>
    %cst_9 = arith.constant dense<0.000000e+00> : vector<8x8xf32>
    %12 = tpu.matmul %9, %10, %cst_9 {dimension_numbers = #tpu.dot_dimension_numbers<[1], [1], [0], [0], [0, 0, 1, 0], [], []>} : vector<8x8xf32>, vector<8x8xf32>, vector<8x8xf32> -> vector<8x8xf32>
    %cst_10 = arith.constant 0.353553385 : f32
    %13 = vector.broadcast %cst_10 : f32 to vector<8x8xf32>
    %14 = arith.mulf %12, %13 : vector<8x8xf32>
    %15 = vector.broadcast %3 : vector<1x8xf32> to vector<8x8xf32>
    %16 = arith.addf %14, %15 : vector<8x8xf32>
    %cst_11 = arith.constant dense<0xFF800000> : vector<8xf32>
    %17 = vector.multi_reduction <maximumf>, %16, %cst_11 [1] : vector<8x8xf32> to vector<8xf32>
    %18 = vector.shape_cast %17 : vector<8xf32> to vector<8x1xf32>
    %19 = vector.broadcast %18 : vector<8x1xf32> to vector<8x8xf32>
    %20 = arith.subf %16, %19 : vector<8x8xf32>
    %21 = math.exp %20 : vector<8x8xf32>
    %cst_12 = arith.constant dense<0.000000e+00> : vector<8xf32>
    %22 = vector.multi_reduction <add>, %21, %cst_12 [1] : vector<8x8xf32> to vector<8xf32>
    %23 = vector.shape_cast %22 : vector<8xf32> to vector<8x1xf32>
    %24 = tpu.reciprocal %23 {approx = true} : vector<8x1xf32> -> vector<8x1xf32>
    %25 = vector.broadcast %24 : vector<8x1xf32> to vector<8x8xf32>
    %26 = arith.mulf %21, %25 : vector<8x8xf32>
    %cst_13 = arith.constant dense<0.000000e+00> : vector<8x8xf32>
    %27 = tpu.matmul %26, %11, %cst_13 {dimension_numbers = #tpu.dot_dimension_numbers<[1], [0], [0], [1], [0, 0, 1, 1], [], []>} : vector<8x8xf32>, vector<8x8xf32>, vector<8x8xf32> -> vector<8x8xf32>
    %28 = vector.extract_strided_slice %8 {offsets = [0, 8], sizes = [8, 8], strides = [1, 1]} : vector<8x96xf32> to vector<8x8xf32>
    %29 = vector.extract_strided_slice %8 {offsets = [0, 40], sizes = [8, 8], strides = [1, 1]} : vector<8x96xf32> to vector<8x8xf32>
    %30 = vector.extract_strided_slice %8 {offsets = [0, 72], sizes = [8, 8], strides = [1, 1]} : vector<8x96xf32> to vector<8x8xf32>
    %cst_14 = arith.constant dense<0.000000e+00> : vector<8x8xf32>
    %31 = tpu.matmul %28, %29, %cst_14 {dimension_numbers = #tpu.dot_dimension_numbers<[1], [1], [0], [0], [0, 0, 1, 0], [], []>} : vector<8x8xf32>, vector<8x8xf32>, vector<8x8xf32> -> vector<8x8xf32>
    %cst_15 = arith.constant 0.353553385 : f32
    %32 = vector.broadcast %cst_15 : f32 to vector<8x8xf32>
    %33 = arith.mulf %31, %32 : vector<8x8xf32>
    %34 = vector.broadcast %3 : vector<1x8xf32> to vector<8x8xf32>
    %35 = arith.addf %33, %34 : vector<8x8xf32>
    %cst_16 = arith.constant dense<0xFF800000> : vector<8xf32>
    %36 = vector.multi_reduction <maximumf>, %35, %cst_16 [1] : vector<8x8xf32> to vector<8xf32>
    %37 = vector.shape_cast %36 : vector<8xf32> to vector<8x1xf32>
    %38 = vector.broadcast %37 : vector<8x1xf32> to vector<8x8xf32>
    %39 = arith.subf %35, %38 : vector<8x8xf32>
    %40 = math.exp %39 : vector<8x8xf32>
    %cst_17 = arith.constant dense<0.000000e+00> : vector<8xf32>
    %41 = vector.multi_reduction <add>, %40, %cst_17 [1] : vector<8x8xf32> to vector<8xf32>
    %42 = vector.shape_cast %41 : vector<8xf32> to vector<8x1xf32>
    %43 = tpu.reciprocal %42 {approx = true} : vector<8x1xf32> -> vector<8x1xf32>
    %44 = vector.broadcast %43 : vector<8x1xf32> to vector<8x8xf32>
    %45 = arith.mulf %40, %44 : vector<8x8xf32>
    %cst_18 = arith.constant dense<0.000000e+00> : vector<8x8xf32>
    %46 = tpu.matmul %45, %30, %cst_18 {dimension_numbers = #tpu.dot_dimension_numbers<[1], [0], [0], [1], [0, 0, 1, 1], [], []>} : vector<8x8xf32>, vector<8x8xf32>, vector<8x8xf32> -> vector<8x8xf32>
    %47 = vector.extract_strided_slice %8 {offsets = [0, 16], sizes = [8, 8], strides = [1, 1]} : vector<8x96xf32> to vector<8x8xf32>
    %48 = vector.extract_strided_slice %8 {offsets = [0, 48], sizes = [8, 8], strides = [1, 1]} : vector<8x96xf32> to vector<8x8xf32>
    %49 = vector.extract_strided_slice %8 {offsets = [0, 80], sizes = [8, 8], strides = [1, 1]} : vector<8x96xf32> to vector<8x8xf32>
    %cst_19 = arith.constant dense<0.000000e+00> : vector<8x8xf32>
    %50 = tpu.matmul %47, %48, %cst_19 {dimension_numbers = #tpu.dot_dimension_numbers<[1], [1], [0], [0], [0, 0, 1, 0], [], []>} : vector<8x8xf32>, vector<8x8xf32>, vector<8x8xf32> -> vector<8x8xf32>
    %cst_20 = arith.constant 0.353553385 : f32
    %51 = vector.broadcast %cst_20 : f32 to vector<8x8xf32>
    %52 = arith.mulf %50, %51 : vector<8x8xf32>
    %53 = vector.broadcast %3 : vector<1x8xf32> to vector<8x8xf32>
    %54 = arith.addf %52, %53 : vector<8x8xf32>
    %cst_21 = arith.constant dense<0xFF800000> : vector<8xf32>
    %55 = vector.multi_reduction <maximumf>, %54, %cst_21 [1] : vector<8x8xf32> to vector<8xf32>
    %56 = vector.shape_cast %55 : vector<8xf32> to vector<8x1xf32>
    %57 = vector.broadcast %56 : vector<8x1xf32> to vector<8x8xf32>
    %58 = arith.subf %54, %57 : vector<8x8xf32>
    %59 = math.exp %58 : vector<8x8xf32>
    %cst_22 = arith.constant dense<0.000000e+00> : vector<8xf32>
    %60 = vector.multi_reduction <add>, %59, %cst_22 [1] : vector<8x8xf32> to vector<8xf32>
    %61 = vector.shape_cast %60 : vector<8xf32> to vector<8x1xf32>
    %62 = tpu.reciprocal %61 {approx = true} : vector<8x1xf32> -> vector<8x1xf32>
    %63 = vector.broadcast %62 : vector<8x1xf32> to vector<8x8xf32>
    %64 = arith.mulf %59, %63 : vector<8x8xf32>
    %cst_23 = arith.constant dense<0.000000e+00> : vector<8x8xf32>
    %65 = tpu.matmul %64, %49, %cst_23 {dimension_numbers = #tpu.dot_dimension_numbers<[1], [0], [0], [1], [0, 0, 1, 1], [], []>} : vector<8x8xf32>, vector<8x8xf32>, vector<8x8xf32> -> vector<8x8xf32>
    %66 = vector.extract_strided_slice %8 {offsets = [0, 24], sizes = [8, 8], strides = [1, 1]} : vector<8x96xf32> to vector<8x8xf32>
    %67 = vector.extract_strided_slice %8 {offsets = [0, 56], sizes = [8, 8], strides = [1, 1]} : vector<8x96xf32> to vector<8x8xf32>
    %68 = vector.extract_strided_slice %8 {offsets = [0, 88], sizes = [8, 8], strides = [1, 1]} : vector<8x96xf32> to vector<8x8xf32>
    %cst_24 = arith.constant dense<0.000000e+00> : vector<8x8xf32>
    %69 = tpu.matmul %66, %67, %cst_24 {dimension_numbers = #tpu.dot_dimension_numbers<[1], [1], [0], [0], [0, 0, 1, 0], [], []>} : vector<8x8xf32>, vector<8x8xf32>, vector<8x8xf32> -> vector<8x8xf32>
    %cst_25 = arith.constant 0.353553385 : f32
    %70 = vector.broadcast %cst_25 : f32 to vector<8x8xf32>
    %71 = arith.mulf %69, %70 : vector<8x8xf32>
    %72 = vector.broadcast %3 : vector<1x8xf32> to vector<8x8xf32>
    %73 = arith.addf %71, %72 : vector<8x8xf32>
    %cst_26 = arith.constant dense<0xFF800000> : vector<8xf32>
    %74 = vector.multi_reduction <maximumf>, %73, %cst_26 [1] : vector<8x8xf32> to vector<8xf32>
    %75 = vector.shape_cast %74 : vector<8xf32> to vector<8x1xf32>
    %76 = vector.broadcast %75 : vector<8x1xf32> to vector<8x8xf32>
    %77 = arith.subf %73, %76 : vector<8x8xf32>
    %78 = math.exp %77 : vector<8x8xf32>
    %cst_27 = arith.constant dense<0.000000e+00> : vector<8xf32>
    %79 = vector.multi_reduction <add>, %78, %cst_27 [1] : vector<8x8xf32> to vector<8xf32>
    %80 = vector.shape_cast %79 : vector<8xf32> to vector<8x1xf32>
    %81 = tpu.reciprocal %80 {approx = true} : vector<8x1xf32> -> vector<8x1xf32>
    %82 = vector.broadcast %81 : vector<8x1xf32> to vector<8x8xf32>
    %83 = arith.mulf %78, %82 : vector<8x8xf32>
    %cst_28 = arith.constant dense<0.000000e+00> : vector<8x8xf32>
    %84 = tpu.matmul %83, %68, %cst_28 {dimension_numbers = #tpu.dot_dimension_numbers<[1], [0], [0], [1], [0, 0, 1, 1], [], []>} : vector<8x8xf32>, vector<8x8xf32>, vector<8x8xf32> -> vector<8x8xf32>
    %85 = tpu.concatenate %27, %46, %65, %84 in 1 : vector<8x8xf32>, vector<8x8xf32>, vector<8x8xf32>, vector<8x8xf32> -> vector<8x32xf32>
    %86 = tpu.concatenate %26, %45, %64, %83 in 1 : vector<8x8xf32>, vector<8x8xf32>, vector<8x8xf32>, vector<8x8xf32> -> vector<8x32xf32>
    %c0_29 = arith.constant 0 : index
    %c0_30 = arith.constant 0 : index
    %c0_31 = arith.constant 0 : index
    %87 = vector.load %arg16[%c0_29, %c0_30, %c0_31] : memref<1x8x32xf32, #tpu.memory_space<vmem>>, vector<1x8x32xf32>
    %88 = vector.shape_cast %87 : vector<1x8x32xf32> to vector<8x32xf32>
    %89 = vector.shape_cast %86 : vector<8x32xf32> to vector<1x8x32xf32>
    tpu.vector_store %arg16[%c0_29, %c0_30, %c0_31], %89 {strides = array<i32>} : memref<1x8x32xf32, #tpu.memory_space<vmem>>, vector<1x8x32xf32>,
    %c0_32 = arith.constant 0 : index
    %c0_33 = arith.constant 0 : index
    %90 = vector.load %arg5[%c0_32, %c0_33] : memref<32x32xf32, #tpu.memory_space<vmem>>, vector<32x32xf32>
    %cst_34 = arith.constant dense<0.000000e+00> : vector<8x32xf32>
    %91 = tpu.matmul %85, %90, %cst_34 {dimension_numbers = #tpu.dot_dimension_numbers<[1], [0], [0], [1], [0, 0, 1, 1], [], []>} : vector<8x32xf32>, vector<32x32xf32>, vector<8x32xf32> -> vector<8x32xf32>
    %c0_35 = arith.constant 0 : index
    %c0_36 = arith.constant 0 : index
    %92 = vector.load %arg6[%c0_35, %c0_36] : memref<1x32xf32, #tpu.memory_space<vmem>>, vector<1x32xf32>
    %93 = vector.broadcast %92 : vector<1x32xf32> to vector<8x32xf32>
    %94 = arith.addf %91, %93 : vector<8x32xf32>
    %95 = arith.addf %94, %1 : vector<8x32xf32>
    %c0_37 = arith.constant 0 : index
    %c0_38 = arith.constant 0 : index
    %96 = vector.load %arg7[%c0_37, %c0_38] : memref<1x32xf32, #tpu.memory_space<vmem>>, vector<1x32xf32>
    %c0_39 = arith.constant 0 : index
    %c0_40 = arith.constant 0 : index
    %97 = vector.load %arg8[%c0_39, %c0_40] : memref<1x32xf32, #tpu.memory_space<vmem>>, vector<1x32xf32>
    %cst_41 = arith.constant dense<0.000000e+00> : vector<8xf32>
    %98 = vector.multi_reduction <add>, %95, %cst_41 [1] : vector<8x32xf32> to vector<8xf32>
    %99 = vector.shape_cast %98 : vector<8xf32> to vector<8x1xf32>
    %cst_42 = arith.constant 3.200000e+01 : f32
    %100 = vector.broadcast %cst_42 : f32 to vector<8x1xf32>
    %101 = arith.divf %99, %100 : vector<8x1xf32>
    %102 = vector.broadcast %101 : vector<8x1xf32> to vector<8x32xf32>
    %103 = arith.subf %95, %102 : vector<8x32xf32>
    %104 = arith.mulf %103, %103 : vector<8x32xf32>
    %cst_43 = arith.constant dense<0.000000e+00> : vector<8xf32>
    %105 = vector.multi_reduction <add>, %104, %cst_43 [1] : vector<8x32xf32> to vector<8xf32>
    %106 = vector.shape_cast %105 : vector<8xf32> to vector<8x1xf32>
    %cst_44 = arith.constant 3.200000e+01 : f32
    %107 = vector.broadcast %cst_44 : f32 to vector<8x1xf32>
    %108 = arith.divf %106, %107 : vector<8x1xf32>
    %109 = vector.broadcast %101 : vector<8x1xf32> to vector<8x32xf32>
    %110 = arith.subf %95, %109 : vector<8x32xf32>
    %cst_45 = arith.constant 9.99999996E-13 : f32
    %111 = vector.broadcast %cst_45 : f32 to vector<8x1xf32>
    %112 = arith.addf %108, %111 : vector<8x1xf32>
    %113 = math.rsqrt %112 : vector<8x1xf32>
    %114 = vector.broadcast %113 : vector<8x1xf32> to vector<8x32xf32>
    %115 = arith.mulf %110, %114 : vector<8x32xf32>
    %116 = vector.broadcast %96 : vector<1x32xf32> to vector<8x32xf32>
    %117 = arith.mulf %115, %116 : vector<8x32xf32>
    %118 = vector.broadcast %97 : vector<1x32xf32> to vector<8x32xf32>
    %119 = arith.addf %117, %118 : vector<8x32xf32>
    %c0_46 = arith.constant 0 : index
    %c0_47 = arith.constant 0 : index
    %120 = vector.load %arg9[%c0_46, %c0_47] : memref<32x64xf32, #tpu.memory_space<vmem>>, vector<32x64xf32>
    %cst_48 = arith.constant dense<0.000000e+00> : vector<8x64xf32>
    %121 = tpu.matmul %119, %120, %cst_48 {dimension_numbers = #tpu.dot_dimension_numbers<[1], [0], [0], [1], [0, 0, 1, 1], [], []>} : vector<8x32xf32>, vector<32x64xf32>, vector<8x64xf32> -> vector<8x64xf32>
    %c0_49 = arith.constant 0 : index
    %c0_50 = arith.constant 0 : index
    %122 = vector.load %arg10[%c0_49, %c0_50] : memref<1x64xf32, #tpu.memory_space<vmem>>, vector<1x64xf32>
    %123 = vector.broadcast %122 : vector<1x64xf32> to vector<8x64xf32>
    %124 = arith.addf %121, %123 : vector<8x64xf32>
    %cst_51 = arith.constant 5.000000e-01 : f32
    %125 = vector.broadcast %cst_51 : f32 to vector<8x64xf32>
    %126 = arith.mulf %124, %125 : vector<8x64xf32>
    %cst_52 = arith.constant 0.707106769 : f32
    %127 = vector.broadcast %cst_52 : f32 to vector<8x64xf32>
    %128 = arith.mulf %124, %127 : vector<8x64xf32>
    %129 = math.erf %128 : vector<8x64xf32>
    %cst_53 = arith.constant 1.000000e+00 : f32
    %130 = vector.broadcast %cst_53 : f32 to vector<8x64xf32>
    %131 = arith.addf %130, %129 : vector<8x64xf32>
    %132 = arith.mulf %126, %131 : vector<8x64xf32>
    %c0_54 = arith.constant 0 : index
    %c0_55 = arith.constant 0 : index
    %133 = vector.load %arg11[%c0_54, %c0_55] : memref<64x32xf32, #tpu.memory_space<vmem>>, vector<64x32xf32>
    %cst_56 = arith.constant dense<0.000000e+00> : vector<8x32xf32>
    %134 = tpu.matmul %132, %133, %cst_56 {dimension_numbers = #tpu.dot_dimension_numbers<[1], [0], [0], [1], [0, 0, 1, 1], [], []>} : vector<8x64xf32>, vector<64x32xf32>, vector<8x32xf32> -> vector<8x32xf32>
    %c0_57 = arith.constant 0 : index
    %c0_58 = arith.constant 0 : index
    %135 = vector.load %arg12[%c0_57, %c0_58] : memref<1x32xf32, #tpu.memory_space<vmem>>, vector<1x32xf32>
    %136 = vector.broadcast %135 : vector<1x32xf32> to vector<8x32xf32>
    %137 = arith.addf %134, %136 : vector<8x32xf32>
    %138 = arith.addf %137, %119 : vector<8x32xf32>
    %c0_59 = arith.constant 0 : index
    %c0_60 = arith.constant 0 : index
    %139 = vector.load %arg13[%c0_59, %c0_60] : memref<1x32xf32, #tpu.memory_space<vmem>>, vector<1x32xf32>
    %c0_61 = arith.constant 0 : index
    %c0_62 = arith.constant 0 : index
    %140 = vector.load %arg14[%c0_61, %c0_62] : memref<1x32xf32, #tpu.memory_space<vmem>>, vector<1x32xf32>
    %cst_63 = arith.constant dense<0.000000e+00> : vector<8xf32>
    %141 = vector.multi_reduction <add>, %138, %cst_63 [1] : vector<8x32xf32> to vector<8xf32>
    %142 = vector.shape_cast %141 : vector<8xf32> to vector<8x1xf32>
    %cst_64 = arith.constant 3.200000e+01 : f32
    %143 = vector.broadcast %cst_64 : f32 to vector<8x1xf32>
    %144 = arith.divf %142, %143 : vector<8x1xf32>
    %145 = vector.broadcast %144 : vector<8x1xf32> to vector<8x32xf32>
    %146 = arith.subf %138, %145 : vector<8x32xf32>
    %147 = arith.mulf %146, %146 : vector<8x32xf32>
    %cst_65 = arith.constant dense<0.000000e+00> : vector<8xf32>
    %148 = vector.multi_reduction <add>, %147, %cst_65 [1] : vector<8x32xf32> to vector<8xf32>
    %149 = vector.shape_cast %148 : vector<8xf32> to vector<8x1xf32>
    %cst_66 = arith.constant 3.200000e+01 : f32
    %150 = vector.broadcast %cst_66 : f32 to vector<8x1xf32>
    %151 = arith.divf %149, %150 : vector<8x1xf32>
    %152 = vector.broadcast %144 : vector<8x1xf32> to vector<8x32xf32>
    %153 = arith.subf %138, %152 : vector<8x32xf32>
    %cst_67 = arith.constant 9.99999996E-13 : f32
    %154 = vector.broadcast %cst_67 : f32 to vector<8x1xf32>
    %155 = arith.addf %151, %154 : vector<8x1xf32>
    %156 = math.rsqrt %155 : vector<8x1xf32>
    %157 = vector.broadcast %156 : vector<8x1xf32> to vector<8x32xf32>
    %158 = arith.mulf %153, %157 : vector<8x32xf32>
    %159 = vector.broadcast %139 : vector<1x32xf32> to vector<8x32xf32>
    %160 = arith.mulf %158, %159 : vector<8x32xf32>
    %161 = vector.broadcast %140 : vector<1x32xf32> to vector<8x32xf32>
    %162 = arith.addf %160, %161 : vector<8x32xf32>
    %c0_68 = arith.constant 0 : index
    %c0_69 = arith.constant 0 : index
    %c0_70 = arith.constant 0 : index
    %163 = vector.load %arg15[%c0_68, %c0_69, %c0_70] : memref<1x8x32xf32, #tpu.memory_space<vmem>>, vector<1x8x32xf32>
    %164 = vector.shape_cast %163 : vector<1x8x32xf32> to vector<8x32xf32>
    %165 = vector.shape_cast %162 : vector<8x32xf32> to vector<1x8x32xf32>
    tpu.vector_store %arg15[%c0_68, %c0_69, %c0_70], %165 {strides = array<i32>} : memref<1x8x32xf32, #tpu.memory_space<vmem>>, vector<1x8x32xf32>,
    return
  }
  func.func @transform_0(%arg0: i32) -> (i32, i32, i32) {
    %c0_i32 = arith.constant 0 : i32
    %c0_i32_0 = arith.constant 0 : i32
    %c0_i32_1 = arith.constant 0 : i32
    return %arg0, %c0_i32, %c0_i32_0 : i32, i32, i32
  }
  func.func @transform_1(%arg0: i32) -> (i32, i32, i32) {
    %c0_i32 = arith.constant 0 : i32
    %c0_i32_0 = arith.constant 0 : i32
    %c0_i32_1 = arith.constant 0 : i32
    return %arg0, %c0_i32, %c0_i32_0 : i32, i32, i32
  }
  func.func @transform_2(%arg0: i32) -> (i32, i32) {
    %c0_i32 = arith.constant 0 : i32
    %c0_i32_0 = arith.constant 0 : i32
    %c0_i32_1 = arith.constant 0 : i32
    return %c0_i32, %c0_i32_0 : i32, i32
  }
  func.func @transform_3(%arg0: i32) -> (i32, i32) {
    %c0_i32 = arith.constant 0 : i32
    %c0_i32_0 = arith.constant 0 : i32
    %c0_i32_1 = arith.constant 0 : i32
    return %c0_i32, %c0_i32_0 : i32, i32
  }
  func.func @transform_4(%arg0: i32) -> (i32, i32) {
    %c0_i32 = arith.constant 0 : i32
    %c0_i32_0 = arith.constant 0 : i32
    %c0_i32_1 = arith.constant 0 : i32
    return %c0_i32, %c0_i32_0 : i32, i32
  }
  func.func @transform_5(%arg0: i32) -> (i32, i32) {
    %c0_i32 = arith.constant 0 : i32
    %c0_i32_0 = arith.constant 0 : i32
    %c0_i32_1 = arith.constant 0 : i32
    return %c0_i32, %c0_i32_0 : i32, i32
  }
  func.func @transform_6(%arg0: i32) -> (i32, i32) {
    %c0_i32 = arith.constant 0 : i32
    %c0_i32_0 = arith.constant 0 : i32
    %c0_i32_1 = arith.constant 0 : i32
    return %c0_i32, %c0_i32_0 : i32, i32
  }
  func.func @transform_7(%arg0: i32) -> (i32, i32) {
    %c0_i32 = arith.constant 0 : i32
    %c0_i32_0 = arith.constant 0 : i32
    %c0_i32_1 = arith.constant 0 : i32
    return %c0_i32, %c0_i32_0 : i32, i32
  }
  func.func @transform_8(%arg0: i32) -> (i32, i32) {
    %c0_i32 = arith.constant 0 : i32
    %c0_i32_0 = arith.constant 0 : i32
    %c0_i32_1 = arith.constant 0 : i32
    return %c0_i32, %c0_i32_0 : i32, i32
  }
  func.func @transform_9(%arg0: i32) -> (i32, i32) {
    %c0_i32 = arith.constant 0 : i32
    %c0_i32_0 = arith.constant 0 : i32
    %c0_i32_1 = arith.constant 0 : i32
    return %c0_i32, %c0_i32_0 : i32, i32
  }
  func.func @transform_10(%arg0: i32) -> (i32, i32) {
    %c0_i32 = arith.constant 0 : i32
    %c0_i32_0 = arith.constant 0 : i32
    %c0_i32_1 = arith.constant 0 : i32
    return %c0_i32, %c0_i32_0 : i32, i32
  }
  func.func @transform_11(%arg0: i32) -> (i32, i32) {
    %c0_i32 = arith.constant 0 : i32
    %c0_i32_0 = arith.constant 0 : i32
    %c0_i32_1 = arith.constant 0 : i32
    return %c0_i32, %c0_i32_0 : i32, i32
  }
  func.func @transform_12(%arg0: i32) -> (i32, i32) {
    %c0_i32 = arith.constant 0 : i32
    %c0_i32_0 = arith.constant 0 : i32
    %c0_i32_1 = arith.constant 0 : i32
    return %c0_i32, %c0_i32_0 : i32, i32
  }
  func.func @transform_13(%arg0: i32) -> (i32, i32) {
    %c0_i32 = arith.constant 0 : i32
    %c0_i32_0 = arith.constant 0 : i32
    %c0_i32_1 = arith.constant 0 : i32
    return %c0_i32, %c0_i32_0 : i32, i32
  }
  func.func @transform_14(%arg0: i32) -> (i32, i32, i32) {
    %c0_i32 = arith.constant 0 : i32
    %c0_i32_0 = arith.constant 0 : i32
    %c0_i32_1 = arith.constant 0 : i32
    return %arg0, %c0_i32, %c0_i32_0 : i32, i32, i32
  }
  func.func @transform_15(%arg0: i32) -> (i32, i32, i32) {
    %c0_i32 = arith.constant 0 : i32
    %c0_i32_0 = arith.constant 0 : i32
    %c0_i32_1 = arith.constant 0 : i32
    return %arg0, %c0_i32, %c0_i32_0 : i32, i32, i32
  }
}

module attributes {stable_mosaic.version = 11 : i64} {
  func.func @_embed_ln_kernel(%arg0: i32, %arg1: memref<1x8x32xf32, #tpu.memory_space<vmem>>, %arg2: memref<1x8x32xf32, #tpu.memory_space<vmem>>, %arg3: memref<1x8x32xf32, #tpu.memory_space<vmem>>, %arg4: memref<1x32xf32, #tpu.memory_space<vmem>>, %arg5: memref<1x32xf32, #tpu.memory_space<vmem>>, %arg6: memref<1x8x32xf32, #tpu.memory_space<vmem>>) attributes {dimension_semantics = [#tpu.dimension_semantics<parallel>], iteration_bounds = array<i64: 2>, scalar_prefetch = 0 : i64, scratch_operands = 0 : i64, tpu.core_type = #tpu.core_type<tc>, window_params = [{transform_indices = @transform_0, window_bounds = array<i64: 1, 8, 32>}, {transform_indices = @transform_1, window_bounds = array<i64: 1, 8, 32>}, {pipeline_mode = #tpu.pipeline_mode<synchronous>, transform_indices = @transform_2, window_bounds = array<i64: 1, 8, 32>}, {pipeline_mode = #tpu.pipeline_mode<synchronous>, transform_indices = @transform_3, window_bounds = array<i64: 1, 32>}, {pipeline_mode = #tpu.pipeline_mode<synchronous>, transform_indices = @transform_4, window_bounds = array<i64: 1, 32>}, {transform_indices = @transform_5, window_bounds = array<i64: 1, 8, 32>}]} {
    %c0 = arith.constant 0 : index
    %c0_0 = arith.constant 0 : index
    %c0_1 = arith.constant 0 : index
    %0 = vector.load %arg1[%c0, %c0_0, %c0_1] : memref<1x8x32xf32, #tpu.memory_space<vmem>>, vector<1x8x32xf32>
    %1 = vector.shape_cast %0 : vector<1x8x32xf32> to vector<8x32xf32>
    %c0_2 = arith.constant 0 : index
    %c0_3 = arith.constant 0 : index
    %c0_4 = arith.constant 0 : index
    %2 = vector.load %arg2[%c0_2, %c0_3, %c0_4] : memref<1x8x32xf32, #tpu.memory_space<vmem>>, vector<1x8x32xf32>
    %3 = vector.shape_cast %2 : vector<1x8x32xf32> to vector<8x32xf32>
    %4 = arith.addf %1, %3 : vector<8x32xf32>
    %c0_5 = arith.constant 0 : index
    %c0_6 = arith.constant 0 : index
    %c0_7 = arith.constant 0 : index
    %5 = vector.load %arg3[%c0_5, %c0_6, %c0_7] : memref<1x8x32xf32, #tpu.memory_space<vmem>>, vector<1x8x32xf32>
    %6 = vector.shape_cast %5 : vector<1x8x32xf32> to vector<8x32xf32>
    %7 = arith.addf %4, %6 : vector<8x32xf32>
    %c0_8 = arith.constant 0 : index
    %c0_9 = arith.constant 0 : index
    %8 = vector.load %arg4[%c0_8, %c0_9] : memref<1x32xf32, #tpu.memory_space<vmem>>, vector<1x32xf32>
    %c0_10 = arith.constant 0 : index
    %c0_11 = arith.constant 0 : index
    %9 = vector.load %arg5[%c0_10, %c0_11] : memref<1x32xf32, #tpu.memory_space<vmem>>, vector<1x32xf32>
    %cst = arith.constant dense<0.000000e+00> : vector<8xf32>
    %10 = vector.multi_reduction <add>, %7, %cst [1] : vector<8x32xf32> to vector<8xf32>
    %11 = vector.shape_cast %10 : vector<8xf32> to vector<8x1xf32>
    %cst_12 = arith.constant 3.200000e+01 : f32
    %12 = vector.broadcast %cst_12 : f32 to vector<8x1xf32>
    %13 = arith.divf %11, %12 : vector<8x1xf32>
    %14 = vector.broadcast %13 : vector<8x1xf32> to vector<8x32xf32>
    %15 = arith.subf %7, %14 : vector<8x32xf32>
    %16 = arith.mulf %15, %15 : vector<8x32xf32>
    %cst_13 = arith.constant dense<0.000000e+00> : vector<8xf32>
    %17 = vector.multi_reduction <add>, %16, %cst_13 [1] : vector<8x32xf32> to vector<8xf32>
    %18 = vector.shape_cast %17 : vector<8xf32> to vector<8x1xf32>
    %cst_14 = arith.constant 3.200000e+01 : f32
    %19 = vector.broadcast %cst_14 : f32 to vector<8x1xf32>
    %20 = arith.divf %18, %19 : vector<8x1xf32>
    %21 = vector.broadcast %13 : vector<8x1xf32> to vector<8x32xf32>
    %22 = arith.subf %7, %21 : vector<8x32xf32>
    %cst_15 = arith.constant 9.99999996E-13 : f32
    %23 = vector.broadcast %cst_15 : f32 to vector<8x1xf32>
    %24 = arith.addf %20, %23 : vector<8x1xf32>
    %25 = math.rsqrt %24 : vector<8x1xf32>
    %26 = vector.broadcast %25 : vector<8x1xf32> to vector<8x32xf32>
    %27 = arith.mulf %22, %26 : vector<8x32xf32>
    %28 = vector.broadcast %8 : vector<1x32xf32> to vector<8x32xf32>
    %29 = arith.mulf %27, %28 : vector<8x32xf32>
    %30 = vector.broadcast %9 : vector<1x32xf32> to vector<8x32xf32>
    %31 = arith.addf %29, %30 : vector<8x32xf32>
    %c0_16 = arith.constant 0 : index
    %c0_17 = arith.constant 0 : index
    %c0_18 = arith.constant 0 : index
    %32 = vector.load %arg6[%c0_16, %c0_17, %c0_18] : memref<1x8x32xf32, #tpu.memory_space<vmem>>, vector<1x8x32xf32>
    %33 = vector.shape_cast %32 : vector<1x8x32xf32> to vector<8x32xf32>
    %34 = vector.shape_cast %31 : vector<8x32xf32> to vector<1x8x32xf32>
    tpu.vector_store %arg6[%c0_16, %c0_17, %c0_18], %34 {strides = array<i32>} : memref<1x8x32xf32, #tpu.memory_space<vmem>>, vector<1x8x32xf32>,
    return
  }
  func.func @transform_0(%arg0: i32) -> (i32, i32, i32) {
    %c0_i32 = arith.constant 0 : i32
    %c0_i32_0 = arith.constant 0 : i32
    %c0_i32_1 = arith.constant 0 : i32
    return %arg0, %c0_i32, %c0_i32_0 : i32, i32, i32
  }
  func.func @transform_1(%arg0: i32) -> (i32, i32, i32) {
    %c0_i32 = arith.constant 0 : i32
    %c0_i32_0 = arith.constant 0 : i32
    %c0_i32_1 = arith.constant 0 : i32
    return %arg0, %c0_i32, %c0_i32_0 : i32, i32, i32
  }
  func.func @transform_2(%arg0: i32) -> (i32, i32, i32) {
    %c0_i32 = arith.constant 0 : i32
    %c0_i32_0 = arith.constant 0 : i32
    %c0_i32_1 = arith.constant 0 : i32
    %c0_i32_2 = arith.constant 0 : i32
    return %c0_i32, %c0_i32_0, %c0_i32_1 : i32, i32, i32
  }
  func.func @transform_3(%arg0: i32) -> (i32, i32) {
    %c0_i32 = arith.constant 0 : i32
    %c0_i32_0 = arith.constant 0 : i32
    %c0_i32_1 = arith.constant 0 : i32
    return %c0_i32, %c0_i32_0 : i32, i32
  }
  func.func @transform_4(%arg0: i32) -> (i32, i32) {
    %c0_i32 = arith.constant 0 : i32
    %c0_i32_0 = arith.constant 0 : i32
    %c0_i32_1 = arith.constant 0 : i32
    return %c0_i32, %c0_i32_0 : i32, i32
  }
  func.func @transform_5(%arg0: i32) -> (i32, i32, i32) {
    %c0_i32 = arith.constant 0 : i32
    %c0_i32_0 = arith.constant 0 : i32
    %c0_i32_1 = arith.constant 0 : i32
    return %arg0, %c0_i32, %c0_i32_0 : i32, i32, i32
  }
}

module attributes {stable_mosaic.version = 11 : i64} {
  func.func @_pooler_kernel(%arg0: i32, %arg1: memref<2x32xf32, #tpu.memory_space<vmem>>, %arg2: memref<32x32xf32, #tpu.memory_space<vmem>>, %arg3: memref<1x32xf32, #tpu.memory_space<vmem>>, %arg4: memref<2x32xf32, #tpu.memory_space<vmem>>) attributes {dimension_semantics = [#tpu.dimension_semantics<arbitrary>], iteration_bounds = array<i64: 1>, scalar_prefetch = 0 : i64, scratch_operands = 0 : i64, tpu.core_type = #tpu.core_type<tc>, window_params = [{pipeline_mode = #tpu.pipeline_mode<synchronous>, transform_indices = @transform_0, window_bounds = array<i64: 2, 32>}, {pipeline_mode = #tpu.pipeline_mode<synchronous>, transform_indices = @transform_1, window_bounds = array<i64: 32, 32>}, {pipeline_mode = #tpu.pipeline_mode<synchronous>, transform_indices = @transform_2, window_bounds = array<i64: 1, 32>}, {pipeline_mode = #tpu.pipeline_mode<synchronous>, transform_indices = @transform_3, window_bounds = array<i64: 2, 32>}]} {
    %c0 = arith.constant 0 : index
    %c0_0 = arith.constant 0 : index
    %0 = vector.load %arg1[%c0, %c0_0] : memref<2x32xf32, #tpu.memory_space<vmem>>, vector<2x32xf32>
    %c0_1 = arith.constant 0 : index
    %c0_2 = arith.constant 0 : index
    %1 = vector.load %arg2[%c0_1, %c0_2] : memref<32x32xf32, #tpu.memory_space<vmem>>, vector<32x32xf32>
    %cst = arith.constant dense<0.000000e+00> : vector<2x32xf32>
    %2 = tpu.matmul %0, %1, %cst {dimension_numbers = #tpu.dot_dimension_numbers<[1], [0], [0], [1], [0, 0, 1, 1], [], []>} : vector<2x32xf32>, vector<32x32xf32>, vector<2x32xf32> -> vector<2x32xf32>
    %c0_3 = arith.constant 0 : index
    %c0_4 = arith.constant 0 : index
    %3 = vector.load %arg3[%c0_3, %c0_4] : memref<1x32xf32, #tpu.memory_space<vmem>>, vector<1x32xf32>
    %4 = vector.broadcast %3 : vector<1x32xf32> to vector<2x32xf32>
    %5 = arith.addf %2, %4 : vector<2x32xf32>
    %6 = math.tanh %5 : vector<2x32xf32>
    %c0_5 = arith.constant 0 : index
    %c0_6 = arith.constant 0 : index
    %7 = vector.load %arg4[%c0_5, %c0_6] : memref<2x32xf32, #tpu.memory_space<vmem>>, vector<2x32xf32>
    tpu.vector_store %arg4[%c0_5, %c0_6], %6 {strides = array<i32>} : memref<2x32xf32, #tpu.memory_space<vmem>>, vector<2x32xf32>,
    return
  }
  func.func @transform_0(%arg0: i32) -> (i32, i32) {
    %c0_i32 = arith.constant 0 : i32
    %c0_i32_0 = arith.constant 0 : i32
    %c0_i32_1 = arith.constant 0 : i32
    return %c0_i32, %c0_i32_0 : i32, i32
  }
  func.func @transform_1(%arg0: i32) -> (i32, i32) {
    %c0_i32 = arith.constant 0 : i32
    %c0_i32_0 = arith.constant 0 : i32
    %c0_i32_1 = arith.constant 0 : i32
    return %c0_i32, %c0_i32_0 : i32, i32
  }
  func.func @transform_2(%arg0: i32) -> (i32, i32) {
    %c0_i32 = arith.constant 0 : i32
    %c0_i32_0 = arith.constant 0 : i32
    %c0_i32_1 = arith.constant 0 : i32
    return %c0_i32, %c0_i32_0 : i32, i32
  }
  func.func @transform_3(%arg0: i32) -> (i32, i32) {
    %c0_i32 = arith.constant 0 : i32
    %c0_i32_0 = arith.constant 0 : i32
    %c0_i32_1 = arith.constant 0 : i32
    return %c0_i32, %c0_i32_0 : i32, i32
  }
}

</mosaic_0001>

<bundles_post_ra>
// kernel: _bert_forward.4
= control target key start
LH: loop header
LB: loop body
LE: loop exit
PB: predicated region body
PF: predicated region fallthrough
CT: control target
= control target key end

     0   :  { %s412_s18 = smov 0   ;;  %s449_s0 = inlined_call_operand.vmem [shape: f32[2,8,32], index: 0, kind: input, shape index: {}]   ;;  %s450_s1 = inlined_call_operand.vmem [shape: f32[2,8,32], index: 1, kind: input, shape index: {}]   ;;  %s451_s2 = inlined_call_operand.vmem [shape: f32[1,8,32], index: 2, kind: input, shape index: {}]   ;;  %s452_s3 = inlined_call_operand.vmem [shape: f32[1,32], index: 3, kind: input, shape index: {}]   ;;  %s453_s4 = inlined_call_operand.vmem [shape: f32[1,32], index: 4, kind: input, shape index: {}]   ;;  %s454_s5 = inlined_call_operand.vmem [shape: f32[2,8,32], index: 5, kind: output, shape index: {}]  }
   0x1 LB: > { %s348_s19 = sadd.s32 4294967295, %s379_s18   ;;  %p352_p0 = scmp.ge.s32.totalorder %s379_s18, 1  ;;  %s379_s18 = sphi %s412_s18, %s15_s18  }
   0x2   : > { %p195_p1 = scmp.lt.s32.totalorder %s379_s18, 3 }
   0x4   : > { %p196_p2 = pnand %p352_p0, %p195_p1 }
   0x5   : > { %p225_p3 = scmp.lt.s32.totalorder (!%p196_p2), %s348_s19, 1 }
   0x6   : > { %199 = sbr.rel (%p196_p2) target bundleno = 289 (0x121), region = 40 }
   0xb   : > { %s456_s19 = smov (!%p225_p3, %s348_s19), 1  ;;  %v240_v2 = vld [vmem:[%s451_s2] sm:$0xff]  ;;  %vm244_vm0 = vcmask 261120   ;;  %v381_v6 = vmov 32.0  }
   0xc   : > { %s420_s20 = sshll.u32 %s456_s19, 3  ;;  %369 = vrcp.f32 %v381_v6  ;;  %v367_v27 = vld [vmem:[%s452_s3] ss:$0 sm:$0xff] }
   0xd   : > { %s228_s23 = scalar_lea.vmem %s449_s0, %s420_s20  ;;  %s232_s26 = scalar_lea.vmem %s450_s1, %s420_s20  ;;  %v368_v29 = vld [vmem:[%s453_s4] ss:$0 sm:$0xff] }
   0xe   : > { %v237_v0 = vld [vmem:[%s228_s23] sm:$0xff]  ;;  %s236_s10 = scalar_lea.vmem %s454_s5, %s420_s20 }
   0xf   : > { %v238_v1 = vld [vmem:[%s232_s26] sm:$0xff] }
  0x10   : > { %v239_v3 = vadd.f32 %v238_v1, %v237_v0 }
  0x12   : > { %v241_v4 = vadd.f32 %v240_v2, %v239_v3  ;;  %v370_v7 = vpop.eup %369 }
  0x13   : > { %v249_v8 = vmul.f32 32.0, %v370_v7  ;;  %vm253_vm1 = vweird.f32 %v370_v7 }
  0x14   : > { %v245_v5 = vsel %vm244_vm0, %v241_v4, 0.0 }
  0x15   : > { %246 = vadd.xlane.f32.xlu0 %v245_v5  ;;  %v250_v9 = vsub.f32 1.0, %v249_v8 }
  0x17   : > { %v251_v10 = vmul.f32 %v370_v7, %v250_v9 }
  0x19   : > { %v252_v11 = vadd.f32 %v370_v7, %v251_v10 }
  0x1b   : > { %v254_v12 = vsel %vm253_vm1, %v370_v7, %v252_v11 }
  0x88   : > { %v247_v13 = vpop.xlane.xlu0 %246 }
  0x89   : > { %v255_v14 = vmul.f32 %v254_v12, %v247_v13 }
  0x8b   : > { %v256_v15 = vsub.f32 %v241_v4, %v255_v14 }
  0x8d   : > { %v257_v16 = vmul.f32 %v256_v15, %v256_v15 }
  0x8f   : > { %v258_v17 = vsel %vm244_vm0, %v257_v16, 0.0 }
  0x90   : > { %259 = vadd.xlane.f32.xlu0 %v258_v17 }
 0x103   : > { %v260_v18 = vpop.xlane.xlu0 %259 }
 0x104   : > { %v261_v19 = vmul.f32 %v260_v18, %v254_v12 }
 0x106   : > { %v262_v20 = vadd.f32 1e-12, %v261_v19 }
 0x108   : > { %371 = vrsqrt.f32 %v262_v20  ;;  %vm269_vm3 = vweird.f32 %v262_v20 }
 0x10e   : > { %v372_v21 = vpop.eup %371 }
 0x10f   : > { %v264_v22 = vmul.f32 %v372_v21, %v262_v20  ;;  %vm270_vm2 = vweird.f32 %v372_v21 }
 0x110   : > { %vm271_vm4 = vmor %vm269_vm3, %vm270_vm2 }
 0x111   : > { %v265_v23 = vmul.f32 %v372_v21, %v264_v22 }
 0x113   : > { %v266_v24 = vmul.f32 0.5, %v265_v23 }
 0x115   : > { %v267_v25 = vsub.f32 1.5, %v266_v24 }
 0x117   : > { %v268_v26 = vmul.f32 %v372_v21, %v267_v25 }
 0x119   : > { %v272_v28 = vsel %vm271_vm4, %v372_v21, %v268_v26 }
 0x11a   : > { %v273_v30 = vmul.f32 %v272_v28, %v256_v15 }
 0x11c   : > { %v277_v31 = vmul.f32 %v367_v27, %v273_v30 }
 0x11e   : > { %v281_v32 = vadd.f32 %v368_v29, %v277_v31 }
 0x120   : > { %282 = vst.msk [vmem:[%s236_s10] sm:$0xff] %vm244_vm0, %v281_v32 }
 0x121 PF: > { %s15_s18 = sadd.s32 1, %s379_s18  }
 0x122   : > { %p12_p4 = scmp.ge.s32.totalorder %s15_s18, 4  }
 0x124   :  { %14 = sbr.rel (!%p12_p4) target bundleno = 1 (0x1), region = 73 }

// kernel: _bert_forward.7
= control target key start
LH: loop header
LB: loop body
LE: loop exit
PB: predicated region body
PF: predicated region fallthrough
CT: control target
= control target key end

     0   :  { %s140_s0 = inlined_call_operand.vmem [shape: f32[2,32], index: 0, kind: input, shape index: {}]   ;;  %s141_s1 = inlined_call_operand.vmem [shape: f32[32,32], index: 1, kind: input, shape index: {}]   ;;  %s142_s2 = inlined_call_operand.vmem [shape: f32[1,32], index: 2, kind: input, shape index: {}]   ;;  %s143_s3 = inlined_call_operand.hbm [shape: f32[2,32], index: 3, kind: output, shape index: {}]  }
   0x1   :  { %v19_v0 = vld [vmem:[%s141_s1 + $0x18] sm:$0xff]  ;;  %v18_v1 = vld [vmem:[%s141_s1 + $0x10] sm:$0xff]  ;;  %v17_v2 = vld [vmem:[%s141_s1 + $0x8] sm:$0xff] }
   0x2   :  { %40 = vmatpush.msra.mxu0 %v19_v0 }
   0x3   :  { %8 = vsyncpa [#allocation3], 0  ;;  %v16_v3 = vld [vmem:[%s141_s1] sm:$0xff]  ;;  %vm24_vm0 = vcmask 261120   ;;  %s98_s24 = smov [#allocation2]   ;;  %s58_s1 = sshll.u32 %s143_s3, 4  ;;  %s59_s1 = int_to_ptr.hbm [resolvable:$true] %s58_s1 }
   0x4   :  { %41 = vmatpush.msra.mxu0 %v18_v1  ;;  %v15_v4 = vld [vmem:[%s140_s0] sm:$0x3]  ;;  %s56_s25 = sshll.u32 %s98_s24, 4  ;;  %vm49_vm1 = vcmask 254976   ;;  %s57_s25 = int_to_ptr.vmem [resolvable:$true] %s56_s25 }
   0x5   :  { %v69_v5 = vld [vmem:[%s142_s2] ss:$0 sm:$0xff] }
   0x6   :  { %42 = vmatpush.msra.mxu0 %v17_v2 }
   0x8   :  { %43 = vmatpush.msra.mxu0 %v16_v3 }
   0x9   :  { %67 = vmatmul.msk.f32.vlgmr.msra.gmra.mxu0 %vm24_vm0, %v15_v4 }
  0x86   :  { %v45_v6 = vpop.f32.mrf.mxu0 }
  0x87   :  { %v46_v7 = vadd.f32 %v69_v5, %v45_v6 }
  0x89   :  { %70 = vtanh.f32 %v46_v7 }
  0x8f   :  { %v71_v8 = vpop.eup %70 }
  0x90   :  { %50 = vst.msk [vmem:[#allocation2] sm:$0x3] %vm49_vm1, %v71_v8 }
  0x91   :  { %61 = dma.vmem_to_hbm [thread:$0]  %s57_s25, 32, %s59_s1, [#allocation3]  }
  0x92   :  { %96 = dma.done.wait [#allocation3], 32  }
  0x93   :  { %97 = vsyncadd [#allocation3], 4294967264 }
  0x94   :  { %66 = vsyncpa [#allocation3], 1 }

// kernel: _bert_forward.5
= control target key start
LH: loop header
LB: loop body
LE: loop exit
PB: predicated region body
PF: predicated region fallthrough
CT: control target
= control target key end

     0   :  { %s1345_s18 = smov 0   ;;  %s1554_s0 = inlined_call_operand.vmem [shape: f32[2,8,32], index: 0, kind: input, shape index: {}]   ;;  %s1555_s1 = inlined_call_operand.vmem [shape: f32[2,1,8], index: 1, kind: input, shape index: {}]   ;;  %s1556_s2 = inlined_call_operand.vmem [shape: f32[32,96], index: 2, kind: input, shape index: {}]   ;;  %s1557_s3 = inlined_call_operand.vmem [shape: f32[1,96], index: 3, kind: input, shape index: {}]   ;;  %s1558_s4 = inlined_call_operand.vmem [shape: f32[32,32], index: 4, kind: input, shape index: {}]   ;;  %s1559_s5 = inlined_call_operand.vmem [shape: f32[1,32], index: 5, kind: input, shape index: {}]   ;;  %s1560_s6 = inlined_call_operand.vmem [shape: f32[1,32], index: 6, kind: input, shape index: {}]   ;;  %s1561_s7 = inlined_call_operand.vmem [shape: f32[1,32], index: 7, kind: input, shape index: {}]   ;;  %s1562_s8 = inlined_call_operand.vmem [shape: f32[32,64], index: 8, kind: input, shape index: {}]   ;;  %s1563_s9 = inlined_call_operand.vmem [shape: f32[1,64], index: 9, kind: input, shape index: {}]   ;;  %s1564_s10 = inlined_call_operand.vmem [shape: f32[64,32], index: 10, kind: input, shape index: {}]   ;;  %s1565_s11 = inlined_call_operand.vmem [shape: f32[1,32], index: 11, kind: input, shape index: {}]   ;;  %s1566_s12 = inlined_call_operand.vmem [shape: f32[1,32], index: 12, kind: input, shape index: {}]   ;;  %s1567_s13 = inlined_call_operand.vmem [shape: f32[1,32], index: 13, kind: input, shape index: {}]   ;;  %s1568_s14 = inlined_call_operand.vmem [shape: f32[2,8,32], index: 14, kind: output, shape index: {0}]   ;;  %s1569_s15 = inlined_call_operand.vmem [shape: f32[2,8,32], index: 15, kind: output, shape index: {1}]  }
   0x1 LB: > { %s1159_s19 = sadd.s32 4294967295, %s1248_s18   ;;  %p1163_p0 = scmp.ge.s32.totalorder %s1248_s18, 1  ;;  %s1248_s18 = sphi %s1345_s18, %s26_s18  }
   0x2   : > { %p447_p1 = scmp.lt.s32.totalorder %s1248_s18, 3 }
   0x4   : > { %p448_p2 = pnand %p1163_p0, %p447_p1 }
   0x5   : > { %p500_p3 = scmp.lt.s32.totalorder (!%p448_p2), %s1159_s19, 1  ;;  %s1250_s24 = smov (!%p448_p2), 64  }
   0x6   : > { %451 = sbr.rel (%p448_p2) target bundleno = 2292 (0x8f4), region = 76  ;;  %s1251_s25 = smov (!%p448_p2), 120  }
   0x7   : > { %s1252_s26 = smov (!%p448_p2), 96   ;;  %s1253_s27 = smov (!%p448_p2), 56  }
   0x8   : > { %s1254_s29 = smov (!%p448_p2), 88   ;;  %s1255_s20 = smov (!%p448_p2), 104  }
   0x9   : > { %s1259_s22 = smov (!%p448_p2), 40   ;;  %s1260_s23 = smov (!%p448_p2), 8  }
   0xb   : > { %v520_v0 = vld [vmem:[%s1556_s2 + $0x18] sm:$0xff]  ;;  %v519_v1 = vld [vmem:[%s1556_s2 + $0x10] sm:$0xff]  ;;  %v518_v2 = vld [vmem:[%s1556_s2 + $0x8] sm:$0xff]  ;;  %s1571_s19 = smov (!%p500_p3, %s1159_s19), 1  ;;  %vm525_vm0 = vcmask 261120   ;;  %vm552_vm1 = vcmask 64512  }
   0xc   : > { %541 = vmatpush.msra.mxu0 %v520_v0  ;;  %v517_v3 = vld [vmem:[%s1556_s2] sm:$0xff]  ;;  %s1368_s28 = sshll.u32 %s1571_s19, 3  ;;  %s506_s16 = scalar_lea.vmem %s1555_s1, %s1571_s19  ;;  %vm833_vm2 = vcmask 130048   ;;  %vm835_vm3 = vcmask 195584   ;;  %vm1008_vm12 = vcmask 523264  }
   0xd   : > { %s503_s21 = scalar_lea.vmem %s1554_s0, %s1368_s28  ;;  %v1210_v5 = vld [vmem:[%s1557_s3] ss:$0 sm:$0xff]  ;;  %s1257_s19 = smov 80  }
   0xe   : > { %542 = vmatpush.msra.mxu0 %v519_v1  ;;  %v1378_v4 = vld [vmem:[%s503_s21] sm:$0xff]  ;;  %s1256_s21 = smov 72   ;;  %s514_s17 = scalar_lea.vmem %s1569_s15, %s1368_s28 }
   0xf   : > { %v1209_v13 = vld [vmem:[%s506_s16] ss:$0 sm:$0xff]  ;;  %s1258_s16 = smov 112  }
  0x10   : > { %543 = vmatpush.msra.mxu0 %v518_v2 }
  0x12   : > { %544 = vmatpush.msra.mxu0 %v517_v3 }
  0x13   : > { %1167 = vmatmul.msk.f32.vlgmr.msra.gmra.mxu0 %vm525_vm0, %v1378_v4 }
  0x90   : > { %v546_v6 = vpop.f32.mrf.mxu0 }
  0x91   : > { %v1385_v7 = vadd.f32 %v1210_v5, %v546_v6 }
  0x93   : > { %593 = vrot.lane.b32.xlu2 %v1385_v7, %s1250_s24  ;;  %619 = vrot.lane.b32.xlu1 %v1385_v7, %s1251_s25  ;;  %s1261_s24 = smov 48   ;;  %s1262_s25 = smov 24  }
  0x94   : > { %550 = vrot.lane.b32.xlu0 %v1385_v7, %s1252_s26  ;;  %s1263_s26 = smov 16  }
  0x9b   : > { %660 = vrot.lane.b32.xlu2 %v1385_v7, %s1253_s27 }
  0x9c   : > { %621 = vrot.lane.b32.xlu0 %v1385_v7, %s1254_s29 }
  0xed   : > { %v594_v8 = vpop.permute.xlu2 %593 }
  0xee   : > { %614 = vmatpush.msra.mxu2 %v594_v8 }
  0xf5   : > { %v661_v9 = vpop.permute.xlu2 %660 }
  0xf6   : > { %681 = vmatpush.msrb.mxu2 %v661_v9  ;;  %v853_v9 = vld [vmem:[%s1558_s4 + $0x18] sm:$0xff] }
 0x105   : > { %v620_v12 = vpop.permute.xlu1 %619 }
 0x106   : > { %v551_v10 = vpop.permute.xlu0 %550 }
 0x107   : > { %1168 = vmatpush.xpose.msk.msra.mxu1 %vm552_vm1, %v551_v10  ;;  %v852_v10 = vld [vmem:[%s1558_s4 + $0x10] sm:$0xff] }
 0x10a   : > { %1169 = vmatmul.msk.f32.vlgmr.msra.gmra.mxu1 %vm552_vm1, %v1385_v7 }
 0x10e   : > { %v622_v11 = vpop.permute.xlu0 %621 }
 0x10f   : > { %1171 = vmatpush.xpose.msk.msra.mxu3 %vm552_vm1, %v622_v11  ;;  %v851_v11 = vld [vmem:[%s1558_s4 + $0x8] sm:$0xff] }
 0x112   : > { %1172 = vmatmul.msk.f32.vlgmr.msra.gmra.mxu3 %vm552_vm1, %v620_v12  ;;  %v850_v12 = vld [vmem:[%s1558_s4] sm:$0xff] }
 0x187   : > { %v574_v14 = vpop.f32.mrf.mxu1 }
 0x188   : > { %v577_v15 = vmul.f32 0.35355338, %v574_v14 }
 0x18a   : > { %v581_v16 = vadd.f32 %v1209_v13, %v577_v15 }
 0x18c   : > { %v582_v17 = vsel %vm552_vm1, %v581_v16, -inf }
 0x18d   : > { %583 = vmax.xlane.f32.xlu1 %v582_v17 }
 0x195   : > { %v644_v18 = vpop.f32.mrf.mxu3 }
 0x196   : > { %v647_v19 = vmul.f32 0.35355338, %v644_v18 }
 0x198   : > { %v648_v20 = vadd.f32 %v1209_v13, %v647_v19  ;;  %v1211_v19 = vld [vmem:[%s1559_s5] ss:$0 sm:$0xff] }
 0x19a   : > { %v649_v21 = vsel %vm552_vm1, %v648_v20, -inf }
 0x19b   : > { %650 = vmax.xlane.f32.xlu2 %v649_v21 }
 0x1a6   : > { %753 = vrot.lane.b32.xlu1 %v1385_v7, %s1255_s20 }
 0x1b3   : > { %755 = vrot.lane.b32.xlu2 %v1385_v7, %s1256_s21 }
 0x200   : > { %v584_v22 = vpop.xlane.xlu1 %583 }
 0x201   : > { %v585_v23 = vsub.f32 %v581_v16, %v584_v22 }
 0x203   : > { %v586_v24 = vmul.f32 1.442695, %v585_v23 }
 0x205   : > { %1218 = vpow2.f32 %v586_v24  ;;  %v1264_v24 = vmov 32.0  }
 0x20b   : > { %v1219_v25 = vpop.eup %1218 }
 0x20c   : > { %v588_v26 = vsel %vm552_vm1, %v1219_v25, 0.0 }
 0x20d   : > { %589 = vadd.xlane.f32.xlu2 %v588_v26 }
 0x20e   : > { %v651_v27 = vpop.xlane.xlu2 %650 }
 0x20f   : > { %v652_v28 = vsub.f32 %v648_v20, %v651_v27 }
 0x211   : > { %v653_v29 = vmul.f32 1.442695, %v652_v28 }
 0x213   : > { %1220 = vpow2.f32 %v653_v29 }
 0x216   : > { %v756_v32 = vpop.permute.xlu2 %755 }
 0x218   : > { %v754_v40 = vpop.permute.xlu1 %753 }
 0x219   : > { %v1221_v30 = vpop.eup %1220 }
 0x21a   : > { %v655_v31 = vsel %vm552_vm1, %v1221_v30, 0.0 }
 0x21b   : > { %656 = vadd.xlane.f32.xlu0 %v655_v31 }
 0x225   : > { %688 = vrot.lane.b32.xlu2 %v1385_v7, %s1257_s19  ;;  %s510_s19 = scalar_lea.vmem %s1568_s14, %s1368_s28 }
 0x22f   : > { %686 = vrot.lane.b32.xlu0 %v1385_v7, %s1258_s16 }
 0x280   : > { %v590_v33 = vpop.xlane.xlu2 %589 }
 0x281   : > { %1222 = vrcp.f32 %v590_v33 }
 0x287   : > { %v1223_v34 = vpop.eup %1222 }
 0x288   : > { %v689_v35 = vpop.permute.xlu2 %688  ;;  %v1410_v36 = vmul.f32 %v1223_v34, %v1219_v25 }
 0x289   : > { %1174 = vmatpush.xpose.msk.msrb.mxu1 %vm552_vm1, %v689_v35  ;;  %v924_v35 = vld [vmem:[%s1562_s8 + $0x18] sm:$0xff] }
 0x28a   : > { %1170 = vmatmul.msk.f32.vlgmr.msra.gmra.mxu2 %vm552_vm1, %v1410_v36 }
 0x28b   : > { %1177 = vmatpush.xpose.msk.msra.mxu2 %vm552_vm1, %v756_v32 }
 0x28d   : > { %873 = vmatpush.msra.mxu1 %v853_v9  ;;  %v1000_v9 = vld [vmem:[%s1564_s10 + $0x20] sm:$0xff] }
 0x28e   : > { %v657_v37 = vpop.xlane.xlu0 %656 }
 0x28f   : > { %1224 = vrcp.f32 %v657_v37  ;;  %874 = vmatpush.msra.mxu1 %v852_v10  ;;  %v923_v37 = vld [vmem:[%s1562_s8 + $0x10] sm:$0xff] }
 0x291   : > { %875 = vmatpush.msra.mxu1 %v851_v11  ;;  %v999_v11 = vld [vmem:[%s1564_s10 + $0x18] sm:$0xff] }
 0x293   : > { %876 = vmatpush.msra.mxu1 %v850_v12 }
 0x295   : > { %v1225_v38 = vpop.eup %1224 }
 0x296   : > { %v1416_v39 = vmul.f32 %v1225_v38, %v1221_v30  ;;  %v922_v38 = vld [vmem:[%s1562_s8 + $0x8] sm:$0xff] }
 0x298   : > { %1173 = vmatmul.msk.f32.vlgmr.msrb.gmra.mxu2 %vm552_vm1, %v1416_v39 }
 0x2a0   : > { %1178 = vmatmul.msk.f32.vlgmr.msra.gmra.mxu2 %vm552_vm1, %v754_v40  ;;  %v921_v40 = vld [vmem:[%s1562_s8] sm:$0xff] }
 0x2a1   : > { %v687_v41 = vpop.permute.xlu0 %686 }
 0x2a2   : > { %1175 = vmatmul.msk.f32.vlgmr.msrb.gmra.mxu1 %vm552_vm1, %v687_v41 }
 0x30d   : > { %v1422_v42 = vpop.f32.mrf.mxu2 }
 0x31b   : > { %v683_v43 = vpop.f32.mrf.mxu2 }
 0x31f   : > { %v711_v44 = vpop.f32.mrf.mxu1 }
 0x320   : > { %v714_v45 = vmul.f32 0.35355338, %v711_v44 }
 0x322   : > { %v715_v46 = vadd.f32 %v1209_v13, %v714_v45 }
 0x323   : > { %v778_v47 = vpop.f32.mrf.mxu2 }
 0x324   : > { %v781_v48 = vmul.f32 0.35355338, %v778_v47  ;;  %v716_v49 = vsel %vm552_vm1, %v715_v46, -inf }
 0x325   : > { %717 = vmax.xlane.f32.xlu2 %v716_v49  ;;  %v1212_v49 = vld [vmem:[%s1560_s6] ss:$0 sm:$0xff] }
 0x326   : > { %v782_v50 = vadd.f32 %v1209_v13, %v781_v48 }
 0x328   : > { %v783_v51 = vsel %vm552_vm1, %v782_v50, -inf }
 0x329   : > { %784 = vmax.xlane.f32.xlu1 %v783_v51 }
 0x342   : > { %794 = vrot.lane.b32.xlu1 %v1385_v7, %s1259_s22 }
 0x398   : > { %v718_v52 = vpop.xlane.xlu2 %717 }
 0x399   : > { %v719_v53 = vsub.f32 %v715_v46, %v718_v52  ;;  %v1213_v52 = vld [vmem:[%s1561_s7] ss:$0 sm:$0xff] }
 0x39b   : > { %v720_v54 = vmul.f32 1.442695, %v719_v53 }
 0x39c   : > { %v785_v55 = vpop.xlane.xlu1 %784 }
 0x39d   : > { %1226 = vpow2.f32 %v720_v54  ;;  %v786_v56 = vsub.f32 %v782_v50, %v785_v55  ;;  %v1214_v55 = vld [vmem:[%s1563_s9] ss:$0 sm:$0xff] }
 0x39f   : > { %v787_v57 = vmul.f32 1.442695, %v786_v56 }
 0x3a1   : > { %1228 = vpow2.f32 %v787_v57 }
 0x3a3   : > { %v1227_v58 = vpop.eup %1226 }
 0x3a4   : > { %v722_v59 = vsel %vm552_vm1, %v1227_v58, 0.0 }
 0x3a5   : > { %723 = vadd.xlane.f32.xlu0 %v722_v59 }
 0x3a7   : > { %v1229_v60 = vpop.eup %1228 }
 0x3a8   : > { %v789_v61 = vsel %vm552_vm1, %v1229_v60, 0.0 }
 0x3a9   : > { %790 = vadd.xlane.f32.xlu2 %v789_v61  ;;  %v1003_v61 = vld [vmem:[%s1564_s10 + $0x38] sm:$0xff] }
 0x3aa   : > { %1020 = vmatpush.msrb.mxu0 %v1003_v61 }
 0x3b4   : > { %v795_v62 = vpop.permute.xlu1 %794 }
 0x3b5   : > { %815 = vmatpush.msrb.mxu2 %v795_v62 }
 0x3b9   : > { %821 = vrot.lane.b32.xlu0 %v683_v43, %s1260_s23 }
 0x3c1   : > { %727 = vrot.lane.b32.xlu2 %v1385_v7, %s1261_s24 }
 0x418   : > { %v724_v63 = vpop.xlane.xlu0 %723 }
 0x419   : > { %1230 = vrcp.f32 %v724_v63 }
 0x41c   : > { %v791_v0 = vpop.xlane.xlu2 %790 }
 0x41d   : > { %1232 = vrcp.f32 %v791_v0  ;;  %v1002_v0 = vld [vmem:[%s1564_s10 + $0x30] sm:$0xff] }
 0x41e   : > { %1234 = vrcp.f32 %v1264_v24  ;;  %1021 = vmatpush.msrb.mxu0 %v1002_v0 }
 0x41f   : > { %v1231_v1 = vpop.eup %1230 }
 0x420   : > { %v1433_v6 = vmul.f32 %v1231_v1, %v1227_v58 }
 0x423   : > { %v1233_v2 = vpop.eup %1232 }
 0x424   : > { %v1431_v3 = vmul.f32 %v1233_v2, %v1229_v60  ;;  %v728_v5 = vpop.permute.xlu2 %727  ;;  %v1235_v25 = vpop.eup %1234 }
 0x425   : > { %748 = vmatpush.msrb.mxu3 %v728_v5  ;;  %v888_v26 = vmul.f32 32.0, %v1235_v25  ;;  %vm892_vm4 = vweird.f32 %v1235_v25  ;;  %v1001_v5 = vld [vmem:[%s1564_s10 + $0x28] sm:$0xff] }
 0x426   : > { %1176 = vmatmul.msk.f32.vlgmr.msrb.gmra.mxu3 %vm552_vm1, %v1433_v6  ;;  %1179 = vmatmul.msk.f32.vlgmr.msrb.gmra.mxu2 %vm552_vm1, %v1431_v3 }
 0x427   : > { %v889_v27 = vsub.f32 1.0, %v888_v26  ;;  %944 = vmatpush.msra.mxu3 %v924_v35  ;;  %1022 = vmatpush.msrb.mxu0 %v1001_v5 }
 0x429   : > { %v890_v28 = vmul.f32 %v1235_v25, %v889_v27  ;;  %945 = vmatpush.msra.mxu3 %v923_v37  ;;  %1023 = vmatpush.msrb.mxu0 %v1000_v9 }
 0x42b   : > { %v822_v13 = vpop.permute.xlu0 %821  ;;  %v891_v29 = vadd.f32 %v1235_v25, %v890_v28  ;;  %946 = vmatpush.msra.mxu3 %v922_v38  ;;  %1024 = vmatpush.msrb.mxu0 %v999_v11 }
 0x42c   : > { %v832_v15 = vsel %vm552_vm1, %v1422_v42, %v822_v13 }
 0x42d   : > { %v1463_v30 = vsel %vm892_vm4, %v1235_v25, %v891_v29  ;;  %947 = vmatpush.msra.mxu3 %v921_v40 }
 0x4a9   : > { %v750_v8 = vpop.f32.mrf.mxu3  ;;  %v817_v7 = vpop.f32.mrf.mxu2 }
 0x4aa   : > { %829 = vrot.lane.b32.xlu0 %v817_v7, %s1262_s25  ;;  %825 = vrot.lane.b32.xlu2 %v750_v8, %s1263_s26 }
 0x504   : > { %v826_v14 = vpop.permute.xlu2 %825 }
 0x505   : > { %v834_v16 = vsel %vm833_vm2, %v832_v15, %v826_v14  ;;  %v998_v14 = vld [vmem:[%s1564_s10 + $0x10] sm:$0xff] }
 0x506   : > { %1025 = vmatpush.msrb.mxu0 %v998_v14 }
 0x51c   : > { %v830_v17 = vpop.permute.xlu0 %829 }
 0x51d   : > { %v836_v18 = vsel %vm835_vm3, %v834_v16, %v830_v17  ;;  %v997_v16 = vld [vmem:[%s1564_s10 + $0x8] sm:$0xff] }
 0x51e   : > { %1180 = vmatmul.msk.f32.vlgmr.msra.gmra.mxu1 %vm525_vm0, %v836_v18  ;;  %1026 = vmatpush.msrb.mxu0 %v997_v16  ;;  %v996_v18 = vld [vmem:[%s1564_s10] sm:$0xff] }
 0x520   : > { %1027 = vmatpush.msrb.mxu0 %v996_v18 }
 0x59b   : > { %v878_v20 = vpop.f32.mrf.mxu1 }
 0x59c   : > { %v879_v21 = vadd.f32 %v1211_v19, %v878_v20 }
 0x59e   : > { %v881_v22 = vadd.f32 %v879_v21, %v1378_v4 }
 0x5a0   : > { %v884_v23 = vsel %vm525_vm0, %v881_v22, 0.0 }
 0x5a1   : > { %885 = vadd.xlane.f32.xlu1 %v884_v23 }
 0x614   : > { %v886_v31 = vpop.xlane.xlu1 %885 }
 0x615   : > { %v894_v32 = vmul.f32 %v1463_v30, %v886_v31 }
 0x617   : > { %v895_v33 = vsub.f32 %v881_v22, %v894_v32 }
 0x619   : > { %v896_v34 = vmul.f32 %v895_v33, %v895_v33 }
 0x61b   : > { %v897_v4 = vsel %vm525_vm0, %v896_v34, 0.0 }
 0x61c   : > { %898 = vadd.xlane.f32.xlu2 %v897_v4 }
 0x634   : > { %837 = vrot.lane.b32.xlu2 %v1416_v39, %s1260_s23 }
 0x68f   : > { %v899_v39 = vpop.xlane.xlu2 %898 }
 0x690   : > { %v900_v41 = vmul.f32 %v899_v39, %v1463_v30 }
 0x692   : > { %v901_v42 = vadd.f32 1e-12, %v900_v41 }
 0x694   : > { %1236 = vrsqrt.f32 %v901_v42  ;;  %vm908_vm6 = vweird.f32 %v901_v42 }
 0x69a   : > { %v1237_v43 = vpop.eup %1236 }
 0x69b   : > { %v903_v44 = vmul.f32 %v1237_v43, %v901_v42  ;;  %vm909_vm5 = vweird.f32 %v1237_v43 }
 0x69c   : > { %vm910_vm7 = vmor %vm908_vm6, %vm909_vm5 }
 0x69d   : > { %v904_v45 = vmul.f32 %v1237_v43, %v903_v44 }
 0x69f   : > { %v905_v46 = vmul.f32 0.5, %v904_v45  ;;  %v1215_v45 = vld [vmem:[%s1565_s11] ss:$0 sm:$0xff] }
 0x6a1   : > { %v906_v47 = vsub.f32 1.5, %v905_v46 }
 0x6a3   : > { %v907_v48 = vmul.f32 %v1237_v43, %v906_v47 }
 0x6a5   : > { %v911_v50 = vsel %vm910_vm7, %v1237_v43, %v907_v48 }
 0x6a6   : > { %v912_v51 = vmul.f32 %v911_v50, %v895_v33 }
 0x6a8   : > { %v916_v53 = vmul.f32 %v1212_v49, %v912_v51 }
 0x6aa   : > { %v1488_v54 = vadd.f32 %v1213_v52, %v916_v53 }
 0x6ac   : > { %1181 = vmatmul.msk.f32.vlgmr.msra.gmra.mxu3 %vm525_vm0, %v1488_v54 }
 0x72f   : > { %v949_v56 = vpop.f32.mrf.mxu3 }
 0x730   : > { %v950_v57 = vadd.f32 %v1214_v55, %v949_v56 }
 0x732   : > { %v953_v58 = vmul.f32 0.70710677, %v950_v57  ;;  %v952_v42 = vmul.f32 0.5, %v950_v57 }
 0x734   : > { %v954_v59 = vmul.f32 %v953_v58, %v953_v58 }
 0x736   : > { %v955_v60 = vmin.f32 %v954_v59, 16.0 }
 0x738   : > { %v956_v62 = vmul.f32 2.1237322e-06, %v955_v60  ;;  %v967_v63 = vmul.f32 3.8918573e-05, %v955_v60 }
 0x73a   : > { %v957_v1 = vadd.f32 0.00028619796, %v956_v62  ;;  %v968_v2 = vadd.f32 0.001143296, %v967_v63  ;;  %v838_v62 = vpop.permute.xlu2 %837 }
 0x73c   : > { %v958_v8 = vmul.f32 %v957_v1, %v955_v60  ;;  %v969_v7 = vmul.f32 %v968_v2, %v955_v60  ;;  %v846_v1 = vsel %vm552_vm1, %v1410_v36, %v838_v62  ;;  %v1217_v2 = vld [vmem:[%s1567_s13] ss:$0 sm:$0xff] }
 0x73e   : > { %v970_v10 = vadd.f32 0.014752088, %v969_v7  ;;  %v959_v12 = vadd.f32 0.0036580483, %v958_v8 }
 0x740   : > { %v971_v13 = vmul.f32 %v970_v10, %v955_v60  ;;  %v960_v17 = vmul.f32 %v959_v12, %v955_v60 }
 0x742   : > { %v972_v15 = vadd.f32 0.112945676, %v971_v13  ;;  %v961_v21 = vadd.f32 0.05243302, %v960_v17 }
 0x744   : > { %v973_v19 = vmul.f32 %v972_v15, %v955_v60  ;;  %v962_v24 = vmul.f32 %v961_v21, %v955_v60 }
 0x746   : > { %v974_v20 = vadd.f32 0.4994258, %v973_v19  ;;  %v963_v25 = vadd.f32 0.18741608, %v962_v24 }
 0x748   : > { %v975_v22 = vmul.f32 %v974_v20, %v955_v60  ;;  %v964_v27 = vmul.f32 %v963_v25, %v955_v60 }
 0x74a   : > { %v976_v23 = vadd.f32 1.0, %v975_v22  ;;  %v965_v32 = vadd.f32 1.1283791, %v964_v27 }
 0x74c   : > { %1238 = vrcp.f32 %v976_v23  ;;  %v988_v31 = vand.u32 2147483648, %v976_v23  ;;  %v986_v34 = vand.u32 2147483647, %v976_v23  ;;  %vm982_vm9 = vweird.f32 %v976_v23 }
 0x74d   : > { %v966_v37 = vmul.f32 %v965_v32, %v953_v58 }
 0x74e   : > { %v989_v35 = vor.u32 1.1754944e-38, %v988_v31  ;;  %vm987_vm11 = vcmp.eq.f32.partialorder %v986_v34, 8.507059e+37 }
 0x752   : > { %v1239_v26 = vpop.eup %1238 }
 0x753   : > { %v978_v28 = vmul.f32 %v1239_v26, %v976_v23  ;;  %vm983_vm8 = vweird.f32 %v1239_v26 }
 0x754   : > { %vm984_vm10 = vmor %vm982_vm9, %vm983_vm8 }
 0x755   : > { %v979_v29 = vsub.f32 1.0, %v978_v28 }
 0x757   : > { %v980_v33 = vmul.f32 %v1239_v26, %v979_v29 }
 0x759   : > { %v981_v4 = vadd.f32 %v1239_v26, %v980_v33 }
 0x75b   : > { %v985_v38 = vsel %vm984_vm10, %v1239_v26, %v981_v4 }
 0x75c   : > { %v990_v40 = vsel %vm987_vm11, %v989_v35, %v985_v38 }
 0x75d   : > { %v991_v39 = vmul.f32 %v990_v40, %v966_v37 }
 0x75f   : > { %v1182_v41 = vclamps-f32 %v991_v39, 1.0 }
 0x761   : > { %v994_v43 = vadd.f32 1.0, %v1182_v41 }
 0x763   : > { %v995_v44 = vmul.f32 %v994_v43, %v952_v42 }
 0x765   : > { %1183 = vmatmul.msk.f32.vlgmr.msrb.gmra.mxu0 %vm1008_vm12, %v995_v44 }
 0x7e2   : > { %v1029_v46 = vpop.f32.mrf.mxu0 }
 0x7e3   : > { %v1030_v47 = vadd.f32 %v1215_v45, %v1029_v46 }
 0x7e5   : > { %v1032_v48 = vadd.f32 %v1030_v47, %v1488_v54 }
 0x7e7   : > { %v1035_v49 = vsel %vm525_vm0, %v1032_v48, 0.0 }
 0x7e8   : > { %1036 = vadd.xlane.f32.xlu0 %v1035_v49 }
 0x7fc   : > { %840 = vrot.lane.b32.xlu0 %v1433_v6, %s1263_s26 }
 0x85b   : > { %v1037_v50 = vpop.xlane.xlu0 %1036 }
 0x85c   : > { %v1038_v51 = vmul.f32 %v1037_v50, %v1463_v30 }
 0x85e   : > { %v1039_v52 = vsub.f32 %v1032_v48, %v1038_v51 }
 0x860   : > { %v1040_v53 = vmul.f32 %v1039_v52, %v1039_v52 }
 0x862   : > { %v1041_v55 = vsel %vm525_vm0, %v1040_v53, 0.0 }
 0x863   : > { %1042 = vadd.xlane.f32.xlu1 %v1041_v55 }
 0x86e   : > { %v841_v0 = vpop.permute.xlu0 %840 }
 0x86f   : > { %v847_v8 = vsel %vm833_vm2, %v846_v1, %v841_v0 }
 0x87c   : > { %843 = vrot.lane.b32.xlu1 %v1431_v3, %s1262_s25  ;;  %v1216_v3 = vld [vmem:[%s1566_s12] ss:$0 sm:$0xff] }
 0x8d6   : > { %v1043_v56 = vpop.xlane.xlu1 %1042 }
 0x8d7   : > { %v1044_v54 = vmul.f32 %v1043_v56, %v1463_v30 }
 0x8d9   : > { %v1045_v57 = vadd.f32 1e-12, %v1044_v54 }
 0x8db   : > { %1240 = vrsqrt.f32 %v1045_v57  ;;  %vm1052_vm14 = vweird.f32 %v1045_v57 }
 0x8e1   : > { %v1241_v58 = vpop.eup %1240 }
 0x8e2   : > { %v1047_v59 = vmul.f32 %v1241_v58, %v1045_v57  ;;  %vm1053_vm13 = vweird.f32 %v1241_v58 }
 0x8e3   : > { %vm1054_vm15 = vmor %vm1052_vm14, %vm1053_vm13 }
 0x8e4   : > { %v1048_v6 = vmul.f32 %v1241_v58, %v1047_v59 }
 0x8e6   : > { %v1049_v60 = vmul.f32 0.5, %v1048_v6 }
 0x8e8   : > { %v1050_v61 = vsub.f32 1.5, %v1049_v60 }
 0x8ea   : > { %v1051_v63 = vmul.f32 %v1241_v58, %v1050_v61 }
 0x8ec   : > { %v1055_v30 = vsel %vm1054_vm15, %v1241_v58, %v1051_v63 }
 0x8ed   : > { %v1056_v5 = vmul.f32 %v1055_v30, %v1039_v52 }
 0x8ee   : > { %v844_v7 = vpop.permute.xlu1 %843 }
 0x8ef   : > { %v1060_v9 = vmul.f32 %v1216_v3, %v1056_v5  ;;  %v848_v10 = vsel %vm835_vm3, %v847_v8, %v844_v7 }
 0x8f0   : > { %849 = vst.msk [vmem:[%s514_s17] sm:$0xff] %vm525_vm0, %v848_v10 }
 0x8f1   : > { %v1064_v36 = vadd.f32 %v1217_v2, %v1060_v9 }
 0x8f3   : > { %1065 = vst.msk [vmem:[%s510_s19] sm:$0xff] %vm525_vm0, %v1064_v36 }
 0x8f4 PF: > { %s26_s18 = sadd.s32 1, %s1248_s18  }
 0x8f5   : > { %p23_p4 = scmp.ge.s32.totalorder %s26_s18, 4  }
 0x8f7   :  { %25 = sbr.rel (!%p23_p4) target bundleno = 1 (0x1), region = 121 }

</bundles_post_ra>
